<compile_context>
chip_gen: v7x
topology: tpu7x:2x2x1
jax: 0.10.0
libtpu: 0.0.40
codegen_flags: <defaults>
</compile_context>

<pallas_src>
import functools

import jax
import jax.numpy as jnp
import numpy as np
from jax.experimental import pallas as pl
from jax.experimental.pallas import tpu as pltpu


# -----------------------------------------------------------------------------
# Pallas kernel: one invocation == the whole forward (only the final timestep
# matters; see faithfulness notes above).
# -----------------------------------------------------------------------------
def stgn_last_step_kernel(x_ref, gw_ref, hw_ref, b_ref, by_ref, y_ref):
    f32 = jnp.float32
    T = x_ref.shape[1]
    # Only the final timestep matters; dt/dL stay appended to the feature row
    # so their contributions are part of the matmul contraction (K = F + 2).
    x = x_ref[:, T - 1, :]                                # (B, K)

    def mm(a, w):
        return jnp.dot(a, w, preferred_element_type=f32)

    # Gate weight slab rows: [i, T, L, u, o, zeta]; bias slab rows:
    # [bi, bT, bL, bu, bo, bz, br, bfin, Wy_row].
    i_t = jax.nn.sigmoid(mm(x, gw_ref[0]) + b_ref[0:1, :])
    T_t = jax.nn.sigmoid(mm(x, gw_ref[1]) + b_ref[1:2, :])
    L_t = jax.nn.sigmoid(mm(x, gw_ref[2]) + b_ref[2:3, :])
    c_tilde = jnp.tanh(mm(x, gw_ref[3]) + b_ref[3:4, :])
    zeta = jnp.tanh(mm(x, gw_ref[5]) + b_ref[5:6, :])
    o_t = jax.nn.sigmoid(mm(x, gw_ref[4]) + mm(zeta, hw_ref[0]) + b_ref[4:5, :])

    # c_prev == 0 -> f_t * c_prev vanishes; h_prev == 0 -> no h-recurrence.
    c_t = i_t * c_tilde * T_t * L_t
    h_t = o_t * jnp.tanh(c_t)                             # (B, H)

    # Attention block is the identity (alpha == 1, memory mean == h_t); the
    # s_t == batch * h_t broadcast quirk is folded into hw_ref[2] at pack time.
    r_u = jnp.tanh(mm(h_t, hw_ref[1]) + b_ref[6:7, :])
    h_fin = jnp.tanh(mm(h_t, hw_ref[2]) + mm(r_u, hw_ref[3]) + b_ref[7:8, :])

    # Output head: Wy row stored as bias-slab row 8, (Wy.bias + by) in SMEM.
    y_ref[...] = jax.nn.sigmoid(
        jnp.sum(h_fin * b_ref[8:9, :], axis=-1, keepdims=True) + by_ref[0, 0])


# -----------------------------------------------------------------------------
# Parameter construction (PyTorch-equivalent layout) -- plain-JAX glue.
# -----------------------------------------------------------------------------
def init_params(key, input_dim, hidden_dim):
    names_hh = ['Wfh', 'Wih', 'WTh', 'WLh', 'Wuh', 'Woh', 'Woz', 'WIh', 'WWh',
                'Wr', 'Wih_final', 'Ws_final', 'Wr_final']
    names_xh = ['Wfx', 'Wix', 'WTx', 'WLx', 'Wux', 'Wox']
    names_1h = ['WTt', 'WLdelta', 'WzT', 'WzL', 'WIAT', 'WIAL']

    def linear(k, out_d, in_d):
        kw, kb = jax.random.split(k)
        bound = 1.0 / float(in_d) ** 0.5
        W = jax.random.uniform(kw, (out_d, in_d), jnp.float32, -bound, bound)
        b = jax.random.uniform(kb, (out_d,), jnp.float32, -bound, bound)
        return W, b

    keys = jax.random.split(key, len(names_hh) + len(names_xh) + len(names_1h) + 1)
    p, ki = {}, 0
    for n in names_hh:
        p[n] = linear(keys[ki], hidden_dim, hidden_dim); ki += 1
    for n in names_xh:
        p[n] = linear(keys[ki], hidden_dim, input_dim); ki += 1
    for n in names_1h:
        p[n] = linear(keys[ki], hidden_dim, 1); ki += 1
    p['Wy'] = linear(keys[ki], 1, hidden_dim); ki += 1
    for n in ['bf', 'bi', 'bT', 'bL', 'bu', 'bo', 'bo_attention', 'br', 'bh_final']:
        p[n] = jnp.zeros((hidden_dim,), jnp.float32)
    p['by'] = jnp.zeros((1,), jnp.float32)
    return p


# -----------------------------------------------------------------------------
# One-time packing into contiguous kernel slabs.  Call ONCE and reuse the
# result across forward calls (hoisted out of the jitted path).
#
# NOTE: the PyTorch broadcast bug makes the output depend on the batch size of
# the call (s_t == batch * h_t); the fold of batch*Ws_final into Wih_final is
# therefore keyed to `batch_size` and the packed weights are only valid for
# inputs with that batch size.
# -----------------------------------------------------------------------------
def pack_params(p, batch_size):
    f32 = jnp.float32
    H, input_dim = p['Wix'][0].shape

    def gate(x_w, dt_w=None, dl_w=None):
        rows = [x_w.T if x_w is not None else jnp.zeros((input_dim, H), f32),
                dt_w.T if dt_w is not None else jnp.zeros((1, H), f32),
                dl_w.T if dl_w is not None else jnp.zeros((1, H), f32)]
        return jnp.concatenate(rows, axis=0)                       # (K, H)

    gate_w = jnp.stack([
        gate(p['Wix'][0]),
        gate(p['WTx'][0], dt_w=p['WTt'][0]),
        gate(p['WLx'][0], dl_w=p['WLdelta'][0]),
        gate(p['Wux'][0]),
        gate(p['Wox'][0]),
        gate(None, dt_w=p['WzT'][0], dl_w=p['WzL'][0]),
    ], axis=0)                                                     # (6, K, H)

    hid_w = jnp.stack([
        p['Woz'][0].T,
        p['Wr'][0].T,
        p['Wih_final'][0].T + jnp.float32(batch_size) * p['Ws_final'][0].T,
        p['Wr_final'][0].T,
    ], axis=0)                                                     # (4, H, H)

    bias_slab = jnp.stack([
        p['Wih'][1] + p['Wix'][1] + p['bi'],
        p['WTh'][1] + p['WTx'][1] + p['WTt'][1] + p['bT'],
        p['WLh'][1] + p['WLx'][1] + p['WLdelta'][1] + p['bL'],
        p['Wuh'][1] + p['Wux'][1] + p['bu'],
        p['Woh'][1] + p['Wox'][1] + p['Woz'][1] + p['bo'],
        p['WzT'][1] + p['WzL'][1],
        p['Wr'][1] + p['br'],
        p['Wih_final'][1] + p['Ws_final'][1] + p['Wr_final'][1] + p['bh_final'],
        p['Wy'][0][0, :],                                          # Wy row
    ], axis=0)                                                     # (9, H)

    by = (p['Wy'][1] + p['by']).reshape(1, 1)                      # SMEM scalar
    return (gate_w.astype(f32), hid_w.astype(f32), bias_slab.astype(f32),
            by.astype(f32))


# -----------------------------------------------------------------------------
# Jitted forward: single un-gridded pallas_call, 4 VMEM slabs + 1 SMEM scalar.
# -----------------------------------------------------------------------------
@jax.jit
def stgn_lstm_forward_packed(packed, X_seq):
    gate_w, hid_w, bias_slab, by = packed
    B = X_seq.shape[0]
    vmem = lambda: pl.BlockSpec(memory_space=pltpu.MemorySpace.VMEM)

    return pl.pallas_call(
        stgn_last_step_kernel,
        out_shape=jax.ShapeDtypeStruct((B, 1), jnp.float32),
        in_specs=[vmem(), vmem(), vmem(), vmem(),
                  pl.BlockSpec(memory_space=pltpu.MemorySpace.SMEM)],
        out_specs=vmem(),
    )(X_seq.astype(jnp.float32), gate_w, hid_w, bias_slab, by)


def stgn_lstm_forward(params, X_seq, memory_size=1):
    """Convenience path (packs every call). Prefer pack_params once + reuse."""
    # TODO(synk): memory_size > 1 has no translation -- the PyTorch forward
    # itself raises a broadcast error for that configuration.
    assert memory_size == 1, "the PyTorch forward only shape-checks for memory_size == 1"
    packed = pack_params(params, X_seq.shape[0])
    return stgn_lstm_forward_packed(packed, X_seq)


# -----------------------------------------------------------------------------
# Literal pure-JAX reference (line-by-line transcription of the PyTorch forward,
# including its broadcasting behaviour) used only for validation.
# -----------------------------------------------------------------------------
def ref_forward(p, memory, X_seq, memory_size):
    del memory
    B, T, _ = X_seq.shape
    H = p['Wfh'][0].shape[0]
    lin = lambda n, x: jnp.matmul(x, p[n][0].T) + p[n][1]
    h_prev = jnp.zeros((B, H), jnp.float32)
    c_prev = jnp.zeros((B, H), jnp.float32)
    mem = []
    h_t = h_prev
    for t in range(T):
        x_t = X_seq[:, t, :-2]
        dt = X_seq[:, t, -2].reshape(-1, 1)
        dL = X_seq[:, t, -1].reshape(-1, 1)
        f_t = jax.nn.sigmoid(lin('Wfh', h_prev) + lin('Wfx', x_t) + p['bf'])
        i_t = jax.nn.sigmoid(lin('Wih', h_prev) + lin('Wix', x_t) + p['bi'])
        T_t = jax.nn.sigmoid(lin('WTh', h_prev) + lin('WTx', x_t) + lin('WTt', dt) + p['bT'])
        L_t = jax.nn.sigmoid(lin('WLh', h_prev) + lin('WLx', x_t) + lin('WLdelta', dL) + p['bL'])
        zeta = jnp.tanh(lin('WzT', dt) + lin('WzL', dL))
        c_tilde = jnp.tanh(lin('Wuh', h_prev) + lin('Wux', x_t) + p['bu'])
        c_t = f_t * c_prev + i_t * c_tilde * T_t * L_t
        o_t = jax.nn.sigmoid(lin('Woh', h_prev) + lin('Wox', x_t) + lin('Woz', zeta) + p['bo'])
        h_t = o_t * jnp.tanh(c_t)
        mem.append(h_t)
        if len(mem) > memory_size:
            mem.pop(0)
        M = jnp.stack(mem, axis=1)
        I_t = lin('WIh', h_t) + lin('WWh', M) + lin('WIAT', dt) + lin('WIAL', dL)
        o_att = jnp.tanh(I_t + p['bo_attention'])
        alpha = jax.nn.softmax(jnp.matmul(o_att, jnp.swapaxes(M, 1, 2)), axis=-1)
        s_t = jnp.sum(alpha * M, axis=1)
        r_u = jnp.tanh(lin('Wr', jnp.mean(M, axis=1)) + p['br'])
        h_t = jnp.tanh(lin('Wih_final', h_t) + lin('Ws_final', s_t)
                       + lin('Wr_final', r_u) + p['bh_final'])
    return jax.nn.sigmoid(lin('Wy', h_t) + p['by'])


if __name__ == "__main__":
    input_dim, hidden_dim, memory_size = 6, 32, 1
    batch, seq_len = 8, 8

    key = jax.random.PRNGKey(0)
    kp, kx = jax.random.split(key)
    params = init_params(kp, input_dim, hidden_dim)
    # X_seq carries [features..., delta_t, delta_L] in its last dim (PyTorch convention).
    X_seq = jax.random.normal(kx, (batch, seq_len, input_dim + 2), jnp.float32)

    # Pack ONCE (outside the per-call jit) and reuse across calls.
    assert memory_size == 1
    packed = pack_params(params, batch_size=batch)

    y = stgn_lstm_forward_packed(packed, X_seq)
    y = jax.block_until_ready(y)
    assert y.shape == (batch, 1)

    # Second call reuses the cached packed weights and the compiled executable.
    y2 = jax.block_until_ready(stgn_lstm_forward_packed(packed, X_seq))

    y_ref = ref_forward(params, [], X_seq, memory_size)
    np.testing.assert_allclose(np.asarray(y), np.asarray(y_ref), rtol=1e-3, atol=1e-3)
    np.testing.assert_allclose(np.asarray(y2), np.asarray(y_ref), rtol=1e-3, atol=1e-3)

    print("KERNEL_OK")
</pallas_src>

<mosaic_0001>
module attributes {stable_mosaic.version = 11 : i64} {
  func.func @stgn_last_step_kernel(%arg0: memref<8x8x8xf32, #tpu.memory_space<vmem>>, %arg1: memref<6x8x32xf32, #tpu.memory_space<vmem>>, %arg2: memref<4x32x32xf32, #tpu.memory_space<vmem>>, %arg3: memref<9x32xf32, #tpu.memory_space<vmem>>, %arg4: memref<1x1xf32, #tpu.memory_space<smem>>, %arg5: memref<8x1xf32, #tpu.memory_space<vmem>>) attributes {dimension_semantics = [], scalar_prefetch = 0 : i64, scratch_operands = 0 : i64, tpu.core_type = #tpu.core_type<tc>} {
    %c0 = arith.constant 0 : index
    %c7 = arith.constant 7 : index
    %c0_0 = arith.constant 0 : index
    %0 = vector.load %arg0[%c0, %c7, %c0_0] : memref<8x8x8xf32, #tpu.memory_space<vmem>>, vector<8x1x8xf32>
    %1 = vector.shape_cast %0 : vector<8x1x8xf32> to vector<8x8xf32>
    %c0_1 = arith.constant 0 : index
    %c0_2 = arith.constant 0 : index
    %c0_3 = arith.constant 0 : index
    %2 = vector.load %arg1[%c0_1, %c0_2, %c0_3] : memref<6x8x32xf32, #tpu.memory_space<vmem>>, vector<1x8x32xf32>
    %3 = vector.shape_cast %2 : vector<1x8x32xf32> to vector<8x32xf32>
    %cst = arith.constant dense<0.000000e+00> : vector<8x32xf32>
    %4 = tpu.matmul %1, %3, %cst {dimension_numbers = #tpu.dot_dimension_numbers<[1], [0], [0], [1], [0, 0, 1, 1], [], []>} : vector<8x8xf32>, vector<8x32xf32>, vector<8x32xf32> -> vector<8x32xf32>
    %c0_4 = arith.constant 0 : index
    %c0_5 = arith.constant 0 : index
    %5 = vector.load %arg3[%c0_4, %c0_5] : memref<9x32xf32, #tpu.memory_space<vmem>>, vector<1x32xf32>
    %6 = vector.broadcast %5 : vector<1x32xf32> to vector<8x32xf32>
    %7 = arith.addf %4, %6 : vector<8x32xf32>
    %8 = arith.negf %7 : vector<8x32xf32>
    %9 = math.exp %8 : vector<8x32xf32>
    %cst_6 = arith.constant 1.000000e+00 : f32
    %10 = vector.broadcast %cst_6 : f32 to vector<8x32xf32>
    %11 = arith.addf %10, %9 : vector<8x32xf32>
    %12 = arith.divf %10, %11 : vector<8x32xf32>
    %c1 = arith.constant 1 : index
    %c0_7 = arith.constant 0 : index
    %c0_8 = arith.constant 0 : index
    %13 = vector.load %arg1[%c1, %c0_7, %c0_8] : memref<6x8x32xf32, #tpu.memory_space<vmem>>, vector<1x8x32xf32>
    %14 = vector.shape_cast %13 : vector<1x8x32xf32> to vector<8x32xf32>
    %cst_9 = arith.constant dense<0.000000e+00> : vector<8x32xf32>
    %15 = tpu.matmul %1, %14, %cst_9 {dimension_numbers = #tpu.dot_dimension_numbers<[1], [0], [0], [1], [0, 0, 1, 1], [], []>} : vector<8x8xf32>, vector<8x32xf32>, vector<8x32xf32> -> vector<8x32xf32>
    %c1_10 = arith.constant 1 : index
    %c0_11 = arith.constant 0 : index
    %16 = vector.load %arg3[%c1_10, %c0_11] : memref<9x32xf32, #tpu.memory_space<vmem>>, vector<1x32xf32>
    %17 = vector.broadcast %16 : vector<1x32xf32> to vector<8x32xf32>
    %18 = arith.addf %15, %17 : vector<8x32xf32>
    %19 = arith.negf %18 : vector<8x32xf32>
    %20 = math.exp %19 : vector<8x32xf32>
    %cst_12 = arith.constant 1.000000e+00 : f32
    %21 = vector.broadcast %cst_12 : f32 to vector<8x32xf32>
    %22 = arith.addf %21, %20 : vector<8x32xf32>
    %23 = arith.divf %21, %22 : vector<8x32xf32>
    %c2 = arith.constant 2 : index
    %c0_13 = arith.constant 0 : index
    %c0_14 = arith.constant 0 : index
    %24 = vector.load %arg1[%c2, %c0_13, %c0_14] : memref<6x8x32xf32, #tpu.memory_space<vmem>>, vector<1x8x32xf32>
    %25 = vector.shape_cast %24 : vector<1x8x32xf32> to vector<8x32xf32>
    %cst_15 = arith.constant dense<0.000000e+00> : vector<8x32xf32>
    %26 = tpu.matmul %1, %25, %cst_15 {dimension_numbers = #tpu.dot_dimension_numbers<[1], [0], [0], [1], [0, 0, 1, 1], [], []>} : vector<8x8xf32>, vector<8x32xf32>, vector<8x32xf32> -> vector<8x32xf32>
    %c2_16 = arith.constant 2 : index
    %c0_17 = arith.constant 0 : index
    %27 = vector.load %arg3[%c2_16, %c0_17] : memref<9x32xf32, #tpu.memory_space<vmem>>, vector<1x32xf32>
    %28 = vector.broadcast %27 : vector<1x32xf32> to vector<8x32xf32>
    %29 = arith.addf %26, %28 : vector<8x32xf32>
    %30 = arith.negf %29 : vector<8x32xf32>
    %31 = math.exp %30 : vector<8x32xf32>
    %cst_18 = arith.constant 1.000000e+00 : f32
    %32 = vector.broadcast %cst_18 : f32 to vector<8x32xf32>
    %33 = arith.addf %32, %31 : vector<8x32xf32>
    %34 = arith.divf %32, %33 : vector<8x32xf32>
    %c3 = arith.constant 3 : index
    %c0_19 = arith.constant 0 : index
    %c0_20 = arith.constant 0 : index
    %35 = vector.load %arg1[%c3, %c0_19, %c0_20] : memref<6x8x32xf32, #tpu.memory_space<vmem>>, vector<1x8x32xf32>
    %36 = vector.shape_cast %35 : vector<1x8x32xf32> to vector<8x32xf32>
    %cst_21 = arith.constant dense<0.000000e+00> : vector<8x32xf32>
    %37 = tpu.matmul %1, %36, %cst_21 {dimension_numbers = #tpu.dot_dimension_numbers<[1], [0], [0], [1], [0, 0, 1, 1], [], []>} : vector<8x8xf32>, vector<8x32xf32>, vector<8x32xf32> -> vector<8x32xf32>
    %c3_22 = arith.constant 3 : index
    %c0_23 = arith.constant 0 : index
    %38 = vector.load %arg3[%c3_22, %c0_23] : memref<9x32xf32, #tpu.memory_space<vmem>>, vector<1x32xf32>
    %39 = vector.broadcast %38 : vector<1x32xf32> to vector<8x32xf32>
    %40 = arith.addf %37, %39 : vector<8x32xf32>
    %41 = math.tanh %40 : vector<8x32xf32>
    %c5 = arith.constant 5 : index
    %c0_24 = arith.constant 0 : index
    %c0_25 = arith.constant 0 : index
    %42 = vector.load %arg1[%c5, %c0_24, %c0_25] : memref<6x8x32xf32, #tpu.memory_space<vmem>>, vector<1x8x32xf32>
    %43 = vector.shape_cast %42 : vector<1x8x32xf32> to vector<8x32xf32>
    %cst_26 = arith.constant dense<0.000000e+00> : vector<8x32xf32>
    %44 = tpu.matmul %1, %43, %cst_26 {dimension_numbers = #tpu.dot_dimension_numbers<[1], [0], [0], [1], [0, 0, 1, 1], [], []>} : vector<8x8xf32>, vector<8x32xf32>, vector<8x32xf32> -> vector<8x32xf32>
    %c5_27 = arith.constant 5 : index
    %c0_28 = arith.constant 0 : index
    %45 = vector.load %arg3[%c5_27, %c0_28] : memref<9x32xf32, #tpu.memory_space<vmem>>, vector<1x32xf32>
    %46 = vector.broadcast %45 : vector<1x32xf32> to vector<8x32xf32>
    %47 = arith.addf %44, %46 : vector<8x32xf32>
    %48 = math.tanh %47 : vector<8x32xf32>
    %c4 = arith.constant 4 : index
    %c0_29 = arith.constant 0 : index
    %c0_30 = arith.constant 0 : index
    %49 = vector.load %arg1[%c4, %c0_29, %c0_30] : memref<6x8x32xf32, #tpu.memory_space<vmem>>, vector<1x8x32xf32>
    %50 = vector.shape_cast %49 : vector<1x8x32xf32> to vector<8x32xf32>
    %cst_31 = arith.constant dense<0.000000e+00> : vector<8x32xf32>
    %51 = tpu.matmul %1, %50, %cst_31 {dimension_numbers = #tpu.dot_dimension_numbers<[1], [0], [0], [1], [0, 0, 1, 1], [], []>} : vector<8x8xf32>, vector<8x32xf32>, vector<8x32xf32> -> vector<8x32xf32>
    %c0_32 = arith.constant 0 : index
    %c0_33 = arith.constant 0 : index
    %c0_34 = arith.constant 0 : index
    %52 = vector.load %arg2[%c0_32, %c0_33, %c0_34] : memref<4x32x32xf32, #tpu.memory_space<vmem>>, vector<1x32x32xf32>
    %53 = vector.shape_cast %52 : vector<1x32x32xf32> to vector<32x32xf32>
    %cst_35 = arith.constant dense<0.000000e+00> : vector<8x32xf32>
    %54 = tpu.matmul %48, %53, %cst_35 {dimension_numbers = #tpu.dot_dimension_numbers<[1], [0], [0], [1], [0, 0, 1, 1], [], []>} : vector<8x32xf32>, vector<32x32xf32>, vector<8x32xf32> -> vector<8x32xf32>
    %55 = arith.addf %51, %54 : vector<8x32xf32>
    %c4_36 = arith.constant 4 : index
    %c0_37 = arith.constant 0 : index
    %56 = vector.load %arg3[%c4_36, %c0_37] : memref<9x32xf32, #tpu.memory_space<vmem>>, vector<1x32xf32>
    %57 = vector.broadcast %56 : vector<1x32xf32> to vector<8x32xf32>
    %58 = arith.addf %55, %57 : vector<8x32xf32>
    %59 = arith.negf %58 : vector<8x32xf32>
    %60 = math.exp %59 : vector<8x32xf32>
    %cst_38 = arith.constant 1.000000e+00 : f32
    %61 = vector.broadcast %cst_38 : f32 to vector<8x32xf32>
    %62 = arith.addf %61, %60 : vector<8x32xf32>
    %63 = arith.divf %61, %62 : vector<8x32xf32>
    %64 = arith.mulf %12, %41 : vector<8x32xf32>
    %65 = arith.mulf %64, %23 : vector<8x32xf32>
    %66 = arith.mulf %65, %34 : vector<8x32xf32>
    %67 = math.tanh %66 : vector<8x32xf32>
    %68 = arith.mulf %63, %67 : vector<8x32xf32>
    %c1_39 = arith.constant 1 : index
    %c0_40 = arith.constant 0 : index
    %c0_41 = arith.constant 0 : index
    %69 = vector.load %arg2[%c1_39, %c0_40, %c0_41] : memref<4x32x32xf32, #tpu.memory_space<vmem>>, vector<1x32x32xf32>
    %70 = vector.shape_cast %69 : vector<1x32x32xf32> to vector<32x32xf32>
    %cst_42 = arith.constant dense<0.000000e+00> : vector<8x32xf32>
    %71 = tpu.matmul %68, %70, %cst_42 {dimension_numbers = #tpu.dot_dimension_numbers<[1], [0], [0], [1], [0, 0, 1, 1], [], []>} : vector<8x32xf32>, vector<32x32xf32>, vector<8x32xf32> -> vector<8x32xf32>
    %c6 = arith.constant 6 : index
    %c0_43 = arith.constant 0 : index
    %72 = vector.load %arg3[%c6, %c0_43] : memref<9x32xf32, #tpu.memory_space<vmem>>, vector<1x32xf32>
    %73 = vector.broadcast %72 : vector<1x32xf32> to vector<8x32xf32>
    %74 = arith.addf %71, %73 : vector<8x32xf32>
    %75 = math.tanh %74 : vector<8x32xf32>
    %c2_44 = arith.constant 2 : index
    %c0_45 = arith.constant 0 : index
    %c0_46 = arith.constant 0 : index
    %76 = vector.load %arg2[%c2_44, %c0_45, %c0_46] : memref<4x32x32xf32, #tpu.memory_space<vmem>>, vector<1x32x32xf32>
    %77 = vector.shape_cast %76 : vector<1x32x32xf32> to vector<32x32xf32>
    %cst_47 = arith.constant dense<0.000000e+00> : vector<8x32xf32>
    %78 = tpu.matmul %68, %77, %cst_47 {dimension_numbers = #tpu.dot_dimension_numbers<[1], [0], [0], [1], [0, 0, 1, 1], [], []>} : vector<8x32xf32>, vector<32x32xf32>, vector<8x32xf32> -> vector<8x32xf32>
    %c3_48 = arith.constant 3 : index
    %c0_49 = arith.constant 0 : index
    %c0_50 = arith.constant 0 : index
    %79 = vector.load %arg2[%c3_48, %c0_49, %c0_50] : memref<4x32x32xf32, #tpu.memory_space<vmem>>, vector<1x32x32xf32>
    %80 = vector.shape_cast %79 : vector<1x32x32xf32> to vector<32x32xf32>
    %cst_51 = arith.constant dense<0.000000e+00> : vector<8x32xf32>
    %81 = tpu.matmul %75, %80, %cst_51 {dimension_numbers = #tpu.dot_dimension_numbers<[1], [0], [0], [1], [0, 0, 1, 1], [], []>} : vector<8x32xf32>, vector<32x32xf32>, vector<8x32xf32> -> vector<8x32xf32>
    %82 = arith.addf %78, %81 : vector<8x32xf32>
    %c7_52 = arith.constant 7 : index
    %c0_53 = arith.constant 0 : index
    %83 = vector.load %arg3[%c7_52, %c0_53] : memref<9x32xf32, #tpu.memory_space<vmem>>, vector<1x32xf32>
    %84 = vector.broadcast %83 : vector<1x32xf32> to vector<8x32xf32>
    %85 = arith.addf %82, %84 : vector<8x32xf32>
    %86 = math.tanh %85 : vector<8x32xf32>
    %c8 = arith.constant 8 : index
    %c0_54 = arith.constant 0 : index
    %87 = vector.load %arg3[%c8, %c0_54] : memref<9x32xf32, #tpu.memory_space<vmem>>, vector<1x32xf32>
    %88 = vector.broadcast %87 : vector<1x32xf32> to vector<8x32xf32>
    %89 = arith.mulf %86, %88 : vector<8x32xf32>
    %cst_55 = arith.constant dense<0.000000e+00> : vector<8xf32>
    %90 = vector.multi_reduction <add>, %89, %cst_55 [1] : vector<8x32xf32> to vector<8xf32>
    %91 = vector.shape_cast %90 : vector<8xf32> to vector<8x1xf32>
    %c0_56 = arith.constant 0 : index
    %c0_57 = arith.constant 0 : index
    %92 = memref.load %arg4[%c0_56, %c0_57] : memref<1x1xf32, #tpu.memory_space<smem>>
    %93 = vector.broadcast %92 : f32 to vector<8x1xf32>
    %94 = arith.addf %91, %93 : vector<8x1xf32>
    %95 = arith.negf %94 : vector<8x1xf32>
    %96 = math.exp %95 : vector<8x1xf32>
    %cst_58 = arith.constant 1.000000e+00 : f32
    %97 = vector.broadcast %cst_58 : f32 to vector<8x1xf32>
    %98 = arith.addf %97, %96 : vector<8x1xf32>
    %99 = arith.divf %97, %98 : vector<8x1xf32>
    %c0_59 = arith.constant 0 : index
    %c0_60 = arith.constant 0 : index
    %100 = vector.load %arg5[%c0_59, %c0_60] : memref<8x1xf32, #tpu.memory_space<vmem>>, vector<8x1xf32>
    tpu.vector_store %arg5[%c0_59, %c0_60], %99 {strides = array<i32>} : memref<8x1xf32, #tpu.memory_space<vmem>>, vector<8x1xf32>,
    return
  }
}

</mosaic_0001>

<bundles_post_ra>
// kernel: stgn_lstm_forward_packed.1
= control target key start
LH: loop header
LB: loop body
LE: loop exit
PB: predicated region body
PF: predicated region fallthrough
CT: control target
= control target key end

     0   :  { %11 = vsyncpa [#allocation4], 0  ;;  %s1410_s0 = inlined_call_operand.hbm [shape: f32[8,8,8], index: 0, kind: input, shape index: {}]   ;;  %s1411_s1 = inlined_call_operand.hbm [shape: f32[6,8,32], index: 1, kind: input, shape index: {}]   ;;  %s1412_s2 = inlined_call_operand.hbm [shape: f32[4,32,32], index: 2, kind: input, shape index: {}]   ;;  %s1413_s3 = inlined_call_operand.hbm [shape: f32[9,32], index: 3, kind: input, shape index: {}]   ;;  %s1414_s4 = inlined_call_operand.<no memory space> [shape: f32[1,1], index: 4, kind: input, shape index: {}]   ;;  %s1415_s5 = inlined_call_operand.vmem [shape: f32[8,1], index: 5, kind: output, shape index: {}]  }
   0x1   :  { %12 = vsyncpa [#allocation6], 0 }
   0x2   :  { %13 = vsyncpa [#allocation9], 0  ;;  %s1245_s18 = smov [#allocation5]   ;;  %s1246_s20 = smov [#allocation3]  }
   0x3   :  { %s31_s19 = sshll.u32 %s1245_s18, 4  ;;  %s19_s21 = sshll.u32 %s1246_s20, 4  ;;  %s32_s19 = int_to_ptr.vmem [resolvable:$true] %s31_s19  ;;  %s1284_s21 = int_to_ptr.vmem [resolvable:$true] %s19_s21 }
   0x4   :  { %s1151_s24 = scalar_lea.hbm %s1411_s1, 768 }
   0x5   :  { %p1152_p0 = scmp.ne.s32.totalorder %s1411_s1, %s1151_s24  ;;  %p1155_p1 = scmp.lt.u32.totalorder %s1151_s24, %s1411_s1 }
   0x7   :  { %p1157_p2 = pnand %p1155_p1, %p1152_p0 }
   0x9   :  { %1160 = shalt.err (!%p1157_p2)
}
   0xa   :  { %s1161_s29 = scalar_lea.vmem %s32_s19, 768  ;;  %p1166_p4 = scmp.lt.s32.totalorder %s32_s19, %s32_s19 }
   0xb   :  { %p1162_p3 = scmp.ne.s32.totalorder %s32_s19, %s1161_s29  ;;  %p1167_p5 = scmp.lt.s32.totalorder %s1161_s29, %s1161_s29 }
   0xd   :  { %p1168_p6 = por %p1167_p5, %p1166_p4 }
   0xf   :  { %p1169_p7 = pnand %p1168_p6, %p1162_p3 }
  0x11   :  { %1172 = shalt.err (!%p1169_p7)
}
  0x12   :  { %s1247_s30 = smov 128   ;;  %s1248_s6 = smov 8  }
  0x13   :  { %37 = dma.hbm_to_vmem [thread:$0]  %s1411_s1, 768, %s32_s19, [#allocation6], %s1247_s30, %s1247_s30, %s1248_s6  }
  0x14   :  { %s1173_s11 = scalar_lea.hbm %s1410_s0, 1024 }
  0x15   :  { %p1174_p8 = scmp.ne.s32.totalorder %s1410_s0, %s1173_s11  ;;  %p1177_p9 = scmp.lt.u32.totalorder %s1173_s11, %s1410_s0 }
  0x17   :  { %p1179_p10 = pnand %p1177_p9, %p1174_p8 }
  0x19   :  { %1182 = shalt.err (!%p1179_p10)
}
  0x1a   :  { %s1183_s16 = scalar_lea.vmem %s1284_s21, 1024  ;;  %p1188_p12 = scmp.lt.s32.totalorder %s1284_s21, %s1284_s21 }
  0x1b   :  { %p1184_p11 = scmp.ne.s32.totalorder %s1284_s21, %s1183_s16  ;;  %p1189_p13 = scmp.lt.s32.totalorder %s1183_s16, %s1183_s16 }
  0x1d   :  { %p1190_p0 = por %p1189_p13, %p1188_p12 }
  0x1f   :  { %p1191_p1 = pnand %p1190_p0, %p1184_p11 }
  0x21   :  { %1194 = shalt.err (!%p1191_p1)
}
  0x22   :  { %25 = dma.hbm_to_vmem [thread:$0]  %s1410_s0, 1024, %s1284_s21, [#allocation4], %s1247_s30, %s1247_s30, %s1248_s6  }
  0x23   :  { %s1249_s18 = smov [#allocation7]   ;;  %s1250_s20 = smov [#allocation8]  }
  0x24   :  { %s43_s19 = sshll.u32 %s1249_s18, 4  ;;  %s55_s22 = sshll.u32 %s1250_s20, 4  ;;  %s44_s19 = int_to_ptr.vmem [resolvable:$true] %s43_s19  ;;  %s1321_s22 = int_to_ptr.vmem [resolvable:$true] %s55_s22 }
  0x25   :  { %s1195_s25 = scalar_lea.hbm %s1412_s2, 2048 }
  0x26   :  { %p1196_p2 = scmp.ne.s32.totalorder %s1412_s2, %s1195_s25  ;;  %p1199_p3 = scmp.lt.u32.totalorder %s1195_s25, %s1412_s2 }
  0x28   :  { %p1201_p4 = pnand %p1199_p3, %p1196_p2 }
  0x2a   :  { %1204 = shalt.err (!%p1201_p4)
}
  0x2b   :  { %s1205_s0 = scalar_lea.vmem %s44_s19, 2048  ;;  %p1210_p6 = scmp.lt.s32.totalorder %s44_s19, %s44_s19 }
  0x2c   :  { %p1206_p5 = scmp.ne.s32.totalorder %s44_s19, %s1205_s0  ;;  %p1211_p7 = scmp.lt.s32.totalorder %s1205_s0, %s1205_s0 }
  0x2e   :  { %p1212_p8 = por %p1211_p7, %p1210_p6 }
  0x30   :  { %p1213_p9 = pnand %p1212_p8, %p1206_p5 }
  0x32   :  { %1216 = shalt.err (!%p1213_p9)
}
  0x33   :  { %49 = dma.hbm_to_vmem [thread:$0]  %s1412_s2, 2048, %s44_s19, [#allocation6], %s1247_s30, %s1247_s30, %s1248_s6  }
  0x34   :  { %s1217_s10 = scalar_lea.hbm %s1413_s3, 256 }
  0x35   :  { %p1218_p10 = scmp.ne.s32.totalorder %s1413_s3, %s1217_s10  ;;  %p1221_p11 = scmp.lt.u32.totalorder %s1217_s10, %s1413_s3 }
  0x37   :  { %p1223_p12 = pnand %p1221_p11, %p1218_p10 }
  0x39   :  { %1226 = shalt.err (!%p1223_p12)
}
  0x3a   :  { %s1227_s15 = scalar_lea.vmem %s1321_s22, 256  ;;  %p1232_p0 = scmp.lt.s32.totalorder %s1321_s22, %s1321_s22 }
  0x3b   :  { %p1228_p13 = scmp.ne.s32.totalorder %s1321_s22, %s1227_s15  ;;  %p1233_p1 = scmp.lt.s32.totalorder %s1227_s15, %s1227_s15 }
  0x3d   :  { %p1234_p2 = por %p1233_p1, %p1232_p0 }
  0x3f   :  { %p1235_p3 = pnand %p1234_p2, %p1228_p13 }
  0x41   :  { %1238 = shalt.err (!%p1235_p3)
}
  0x42   :  { %61 = dma.hbm_to_vmem [thread:$0]  %s1413_s3, 256, %s1321_s22, [#allocation9], %s1247_s30, %s1247_s30, %s1248_s6  }
  0x43   :  { %1239 = dma.done.wait [#allocation4], 1024  }
  0x44   :  { %1240 = vsyncadd [#allocation4], 4294966272 }
  0x45   :  { %1241 = dma.done.wait [#allocation6], 2816  }
  0x46   :  { %1242 = vsyncadd [#allocation6], 4294964480 }
  0x47   :  { %1243 = dma.done.wait [#allocation9], 256  }
  0x48   :  { %1244 = vsyncadd [#allocation9], 4294967040  ;;  %v1251_v0 = vmov 0.0   ;;  %vm1252_vm0 = vmmov 0   ;;  %v282_v1 = vld [vmem:[#allocation5 + $0x10] sm:$0xff]  ;;  %v84_v2 = vld [vmem:[#allocation5] sm:$0xff] }
  0x49   :  { %1024 = vmatprep.subr.mxu0 %v1251_v0  ;;  %1014 = vmatprep.subr.mxu1 %v1251_v0  ;;  %vm99_vm1 = vcmask 1041409   ;;  %v77_v3 = vld [vmem:[#allocation3 + $0xf] sm:$0x1]  ;;  %v78_v4 = vld [vmem:[#allocation3 + $0x17] sm:$0x1]  ;;  %vm102_vm2 = vcmask 1042434  }
  0x4a   :  { %1016 = vmatprep.mubr.msk.f32.mxu1 %vm1252_vm0, %v1251_v0  ;;  %1026 = vmatprep.mubr.msk.f32.mxu0 %vm1252_vm0, %v1251_v0  ;;  %v79_v5 = vld [vmem:[#allocation3 + $0x1f] sm:$0x1]  ;;  %v76_v6 = vld [vmem:[#allocation3 + $0x7] sm:$0x1]  ;;  %v81_v8 = vld [vmem:[#allocation3 + $0x2f] sm:$0x1] }
  0x4b   :  { %1025 = vmatpush3.msra.mxu0 %v282_v1  ;;  %1015 = vmatpush3.msra.mxu1 %v84_v2  ;;  %v80_v7 = vld [vmem:[#allocation3 + $0x27] sm:$0x1]  ;;  %v82_v9 = vld [vmem:[#allocation3 + $0x37] sm:$0x1]  ;;  %v98_v10 = vrot.slane %v77_v3, 7  ;;  %v101_v11 = vrot.slane %v78_v4, 6 }
  0x4c   :  { %1034 = vmatprep.subr.mxu0 %v1251_v0  ;;  %1019 = vmatprep.subr.mxu1 %v1251_v0  ;;  %v104_v12 = vrot.slane %v79_v5, 5  ;;  %v83_v13 = vld [vmem:[#allocation3 + $0x3f] sm:$0x1]  ;;  %vm105_vm3 = vcmask 1043459   ;;  %v107_v14 = vrot.slane %v80_v7, 4  ;;  %vm108_vm4 = vcmask 1044484  }
  0x4d   :  { %v100_v15 = vsel %vm99_vm1, %v98_v10, %v76_v6  ;;  %v110_v16 = vrot.slane %v81_v8, 3  ;;  %vm111_vm5 = vcmask 1045509   ;;  %v113_v18 = vrot.slane %v82_v9, 2  ;;  %v443_v24 = vld [vmem:[#allocation5 + $0x28] sm:$0xff]  ;;  %v365_v27 = vld [vmem:[#allocation5 + $0x18] sm:$0xff]  ;;  %v522_v28 = vld [vmem:[#allocation7] sm:$0xff] }
  0x4e   :  { %v103_v17 = vsel %vm102_vm2, %v101_v11, %v100_v15  ;;  %vm114_vm6 = vcmask 1046534   ;;  %v116_v20 = vrot.slane %v83_v13, 1  ;;  %vm117_vm7 = vcmask 1047559   ;;  %v199_v25 = vld [vmem:[#allocation5 + $0x8] sm:$0xff]  ;;  %v523_v29 = vld [vmem:[#allocation7 + $0x8] sm:$0xff]  ;;  %v524_v32 = vld [vmem:[#allocation7 + $0x10] sm:$0xff] }
  0x4f   :  { %v106_v19 = vsel %vm105_vm3, %v104_v12, %v103_v17  ;;  %vm119_vm8 = vcmask 64512   ;;  %v1089_v30 = vpack.c.bf16 %v523_v29, %v522_v28  ;;  %v1253_v31 = vmov 0.0|0.0   ;;  %v525_v33 = vld [vmem:[#allocation7 + $0x18] sm:$0xff]  ;;  %v521_v35 = vld [vmem:[#allocation5 + $0x20] sm:$0xff]  ;;  %v964_v36 = vld [vmem:[#allocation8 + $0x2] ss:$0 sm:$0xff] }
  0x50   :  { %v109_v21 = vsel %vm108_vm4, %v107_v14, %v106_v19  ;;  %v1092_v34 = vpack.c.bf16 %v525_v33, %v524_v32  ;;  %v958_v37 = vld [vmem:[#allocation8] ss:$0 sm:$0xff]  ;;  %v961_v44 = vld [vmem:[#allocation8 + $0x1] ss:$0 sm:$0xff]  ;;  %v969_v45 = vld [vmem:[#allocation8 + $0x5] ss:$0 sm:$0xff] }
  0x51   :  { %v112_v22 = vsel %vm111_vm5, %v110_v16, %v109_v21  ;;  %v967_v57 = vld [vmem:[#allocation8 + $0x3] ss:$0 sm:$0xff]  ;;  %vm526_vm9 = vcmask 261120   ;;  %v689_v13 = vld [vmem:[#allocation7 + $0x28] sm:$0xff]  ;;  %v690_v14 = vld [vmem:[#allocation7 + $0x30] sm:$0xff]  ;;  %vm949_vm10 = vcmask 7168  }
  0x52   :  { %v115_v23 = vsel %vm114_vm6, %v113_v18, %v112_v22  ;;  %v688_v12 = vld [vmem:[#allocation7 + $0x20] sm:$0xff]  ;;  %v691_v16 = vld [vmem:[#allocation7 + $0x38] sm:$0xff]  ;;  %v774_v33 = vld [vmem:[#allocation7 + $0x50] sm:$0xff] }
  0x53   :  { %v118_v26 = vsel %vm117_vm7, %v116_v20, %v115_v23  ;;  %v1095_v15 = vpack.c.bf16 %v689_v13, %v688_v12  ;;  %v1098_v17 = vpack.c.bf16 %v691_v16, %v690_v14  ;;  %v973_v19 = vld [vmem:[#allocation8 + $0x4] ss:$0 sm:$0xff] }
  0x54   :  { %1017 = vmatmul.mubr.msk.f32.vlgmr.msra.gmra.mrb[0].mxu1 %vm119_vm8, %v118_v26  ;;  %1027 = vmatmul.mubr.msk.f32.vlgmr.msra.gmra.mrb[0].mxu0 %vm119_vm8, %v118_v26 }
  0x55   :  { %1035 = vmatpush3.msra.mxu0 %v443_v24  ;;  %1020 = vmatpush3.msra.mxu1 %v199_v25 }
  0x56   :  { %1021 = vmatprep.mubr.msk.f32.mxu1 %vm1252_vm0, %v1251_v0  ;;  %1036 = vmatprep.mubr.msk.f32.mxu0 %vm1252_vm0, %v1251_v0 }
  0x57   :  { %1029 = vmatprep.subr.mxu1 %v1251_v0  ;;  %1050 = vmatprep.subr.mxu0 %v1251_v0 }
  0x58   :  { %1022 = vmatmul.mubr.msk.f32.vlgmr.msra.gmra.mrb[2].mxu1 %vm119_vm8, %v118_v26  ;;  %1037 = vmatmul.mubr.msk.f32.vlgmr.msra.gmra.mrb[2].mxu0 %vm119_vm8, %v118_v26 }
  0x59   :  { %1030 = vmatpush3.msra.mxu1 %v365_v27  ;;  %1031 = vmatprep.mubr.msk.f32.mxu1 %vm1252_vm0, %v1251_v0  ;;  %v773_v27 = vld [vmem:[#allocation7 + $0x48] sm:$0xff] }
  0x5a   :  { %1052 = vmatprep.mubr.msk.f32.mxu0 %vm1252_vm0, %v1251_v0  ;;  %1088 = vmatprep.subr.bf16.mxu1 %v1253_v31 }
  0x5b   :  { %1051 = vmatpush3.msra.mxu0 %v521_v35 }
  0x5c   :  { %1032 = vmatmul.mubr.msk.f32.vlgmr.msra.gmra.mrb[4].mxu1 %vm119_vm8, %v118_v26  ;;  %1053 = vmatmul.mubr.msk.f32.vlgmr.msra.gmra.mrb[4].mxu0 %vm119_vm8, %v118_v26  ;;  %v772_v26 = vld [vmem:[#allocation7 + $0x40] sm:$0xff] }
  0x5d   :  { %1047 = vmatprep.mubr.msk.f32.mxu1 %vm1252_vm0, %v1251_v0  ;;  %1090 = vmatpush3.bf16.msra.mxu1 %v1089_v30  ;;  %v1107_v30 = vpack.c.bf16 %v773_v27, %v772_v26 }
  0x5e   :  { %1091 = vmatprep.subr.bf16.mxu1 %v1253_v31  ;;  %1094 = vmatprep.subr.bf16.mxu0 %v1253_v31 }
  0x5f   :  { %1063 = vmatprep.mubr.msk.f32.mxu0 %vm1252_vm0, %v1251_v0  ;;  %1096 = vmatpush3.bf16.msra.mxu0 %v1095_v15 }
  0x60   :  { %1097 = vmatprep.subr.bf16.mxu0 %v1253_v31 }
  0x61   :  { %1093 = vmatpush3.bf16.msra.mxu1 %v1092_v34  ;;  %v775_v34 = vld [vmem:[#allocation7 + $0x58] sm:$0xff] }
  0x62   :  { %1100 = vmatprep.subr.bf16.mxu1 %v1253_v31  ;;  %v1110_v35 = vpack.c.bf16 %v775_v34, %v774_v33 }
  0x63   :  { %1099 = vmatpush3.bf16.msra.mxu0 %v1098_v17 }
  0x64   :  { %1106 = vmatprep.subr.bf16.mxu0 %v1253_v31 }
 0x127   :  { %v354_v38 = vpop.f32.mrb[0].mxu0  ;;  %v188_v39 = vpop.f32.mrb[0].mxu1 }
 0x128   :  { %v355_v40 = vadd.f32 %v964_v36, %v354_v38  ;;  %v1028_v41 = vpop.f32.mrb[1].mxu0  ;;  %v189_v42 = vadd.f32 %v958_v37, %v188_v39  ;;  %v1018_v43 = vpop.f32.mrb[1].mxu1  ;;  %v777_v36 = vld [vmem:[#allocation7 + $0x60] sm:$0xff]  ;;  %v778_v37 = vld [vmem:[#allocation7 + $0x68] sm:$0xff]  ;;  %v779_v39 = vld [vmem:[#allocation7 + $0x70] sm:$0xff] }
 0x129   :  { %v1101_v38 = vpack.c.bf16 %v778_v37, %v777_v36 }
 0x12a   :  { %v966_v46 = vmul.f32 -1.442695, %v355_v40  ;;  %v960_v47 = vmul.f32 -1.442695, %v189_v42  ;;  %v780_v40 = vld [vmem:[#allocation7 + $0x78] sm:$0xff] }
 0x12b   :  { %v271_v48 = vpop.f32.mrb[2].mxu1  ;;  %v515_v49 = vpop.f32.mrb[2].mxu0  ;;  %v1104_v41 = vpack.c.bf16 %v780_v40, %v779_v39  ;;  %v975_v42 = vld [vmem:[#allocation8 + $0x6] ss:$0 sm:$0xff] }
 0x12c   :  { %1121 = vpow2.f32 %v966_v46  ;;  %v272_v50 = vadd.f32 %v961_v44, %v271_v48  ;;  %v516_v51 = vadd.f32 %v969_v45, %v515_v49  ;;  %v1038_v52 = vpop.f32.mrb[3].mxu0  ;;  %v1023_v53 = vpop.f32.mrb[3].mxu1  ;;  %v979_v49 = vld [vmem:[#allocation8 + $0x7] ss:$0 sm:$0xff] }
 0x12d   :  { %1123 = vpow2.f32 %v960_v47 }
 0x12e   :  { %v963_v54 = vmul.f32 -1.442695, %v272_v50  ;;  %1125 = vtanh.f32 %v516_v51 }
 0x12f   :  { %v437_v55 = vpop.f32.mrb[4].mxu1  ;;  %v666_v10 = vpop.f32.mrb[4].mxu0 }
 0x130   :  { %1127 = vpow2.f32 %v963_v54  ;;  %v1033_v56 = vpop.f32.mrb[5].mxu1  ;;  %v438_v58 = vadd.f32 %v967_v57, %v437_v55  ;;  %v1054_v11 = vpop.f32.mrb[5].mxu0 }
 0x131   :  { %v941_v56 = vstv %s1414_s4 }
 0x132   :  { %1129 = vtanh.f32 %v438_v58 }
 0x136   :  { %v1122_v59 = vpop.eup %1121 }
 0x137   :  { %v1124_v60 = vpop.eup %1123  ;;  %v361_v1 = vadd.f32 1.0, %v1122_v59 }
 0x138   :  { %v1126_v61 = vpop.eup %1125  ;;  %v195_v62 = vadd.f32 1.0, %v1124_v60 }
 0x139   :  { %1048 = vmatmul.mubr.msk.f32.vlgmr.msra.gmra.mrb[6].mxu1 %vm526_vm9, %v1126_v61 }
 0x13a   :  { %v1128_v63 = vpop.eup %1127  ;;  %1131 = vrcp.f32 %v195_v62  ;;  %1074 = vmatprep.mubr.msk.f32.mxu1 %vm1252_vm0, %v1251_v0  ;;  %1102 = vmatpush3.bf16.msra.mxu1 %v1101_v38 }
 0x13b   :  { %v278_v2 = vadd.f32 1.0, %v1128_v63  ;;  %1103 = vmatprep.subr.bf16.mxu1 %v1253_v31 }
 0x13c   :  { %v1130_v3 = vpop.eup %1129 }
 0x13d   :  { %1133 = vrcp.f32 %v278_v2 }
 0x13e   :  { %1135 = vrcp.f32 %v361_v1  ;;  %1105 = vmatpush3.bf16.msra.mxu1 %v1104_v41 }
 0x144   :  { %v1132_v4 = vpop.eup %1131 }
 0x145   :  { %v682_v5 = vmul.f32 %v1132_v4, %v1130_v3 }
 0x147   :  { %v1134_v6 = vpop.eup %1133 }
 0x148   :  { %v683_v7 = vmul.f32 %v1134_v6, %v682_v5  ;;  %v1136_v8 = vpop.eup %1135 }
 0x14a   :  { %v684_v9 = vmul.f32 %v1136_v8, %v683_v7 }
 0x20c   :  { %v596_v18 = vpop.f32.mrb[6].mxu1 }
 0x20d   :  { %v667_v20 = vadd.f32 %v666_v10, %v596_v18  ;;  %v1049_v21 = vpop.f32.mrb[7].mxu1 }
 0x20f   :  { %v675_v22 = vadd.f32 %v973_v19, %v667_v20 }
 0x211   :  { %v974_v23 = vmul.f32 -1.442695, %v675_v22 }
 0x213   :  { %1137 = vpow2.f32 %v974_v23 }
 0x214   :  { %1139 = vtanh.f32 %v684_v9 }
 0x21d   :  { %v1138_v24 = vpop.eup %1137 }
 0x21e   :  { %v679_v25 = vadd.f32 1.0, %v1138_v24  ;;  %v1140_v28 = vpop.eup %1139 }
 0x220   :  { %1141 = vrcp.f32 %v679_v25 }
 0x22a   :  { %v1142_v29 = vpop.eup %1141 }
 0x22b   :  { %v686_v32 = vmul.f32 %v1142_v29, %v1140_v28 }
 0x22d   :  { %1064 = vmatmul.mubr.msk.f32.vlgmr.msra.gmra.mrb[6].mxu0 %vm526_vm9, %v686_v32 }
 0x22e   :  { %1108 = vmatpush3.bf16.msra.mxu0 %v1107_v30  ;;  %1085 = vmatprep.mubr.msk.f32.mxu0 %vm1252_vm0, %v1251_v0 }
 0x22f   :  { %1109 = vmatprep.subr.bf16.mxu0 %v1253_v31  ;;  %v980_v31 = vld [vmem:[#allocation8 + $0x8] ss:$0 sm:$0xff] }
 0x232   :  { %1111 = vmatpush3.bf16.msra.mxu0 %v1110_v35 }
 0x235   :  { %1086 = vmatmul.mubr.msk.f32.vlgmr.msra.gmra.mrb[8].mxu0 %vm526_vm9, %v686_v32 }
 0x300   :  { %v766_v43 = vpop.f32.mrb[6].mxu0 }
 0x301   :  { %v767_v44 = vadd.f32 %v975_v42, %v766_v43  ;;  %v1065_v45 = vpop.f32.mrb[7].mxu0 }
 0x303   :  { %1143 = vtanh.f32 %v767_v44 }
 0x308   :  { %v920_v0 = vpop.f32.mrb[8].mxu0 }
 0x309   :  { %v1087_v46 = vpop.f32.mrb[9].mxu0 }
 0x30d   :  { %v1144_v47 = vpop.eup %1143 }
 0x30e   :  { %1075 = vmatmul.mubr.msk.f32.vlgmr.msra.gmra.mrb[8].mxu1 %vm526_vm9, %v1144_v47 }
 0x3e1   :  { %v850_v48 = vpop.f32.mrb[8].mxu1 }
 0x3e2   :  { %v921_v50 = vadd.f32 %v920_v0, %v850_v48  ;;  %v1076_v51 = vpop.f32.mrb[9].mxu1 }
 0x3e4   :  { %v929_v52 = vadd.f32 %v979_v49, %v921_v50 }
 0x3e6   :  { %1145 = vtanh.f32 %v929_v52 }
 0x3f0   :  { %v1146_v53 = vpop.eup %1145 }
 0x3f1   :  { %v936_v54 = vmul.f32 %v1146_v53, %v980_v31 }
 0x3f3   :  { %v937_v55 = vsel %vm526_vm9, %v936_v54, 0.0 }
 0x3f4   :  { %938 = vadd.xlane.f32.xlu0 %v937_v55 }
 0x481   :  { %v939_v57 = vpop.xlane.xlu0 %938 }
 0x482   :  { %v942_v58 = vadd.f32 %v941_v56, %v939_v57 }
 0x484   :  { %v981_v59 = vmul.f32 -1.442695, %v942_v58 }
 0x486   :  { %1147 = vpow2.f32 %v981_v59 }
 0x490   :  { %v1148_v60 = vpop.eup %1147 }
 0x491   :  { %v946_v61 = vadd.f32 1.0, %v1148_v60 }
 0x493   :  { %1149 = vrcp.f32 %v946_v61 }
 0x49d   :  { %v1150_v62 = vpop.eup %1149 }
 0x49e   :  { %950 = vst.msk [vmem:[%s1415_s5] sm:$0xff] %vm949_vm10, %v1150_v62 }
 0x49f   :  { %955 = vsyncpa [#allocation4], 1 }
 0x4a0   :  { %956 = vsyncpa [#allocation6], 1 }
 0x4a1   :  { %957 = vsyncpa [#allocation9], 1 }

</bundles_post_ra>
